<compile_context>
chip_gen: v6e
topology: v6e:2x2x1
jax: 0.10.0
libtpu: 0.0.40
codegen_flags: <defaults>
</compile_context>

<pallas_src>
import functools

import jax
import jax.numpy as jnp
from jax.experimental import pallas as pl
from jax.experimental.pallas import tpu as pltpu


def _round_up(n: int, m: int) -> int:
    return ((n + m - 1) // m) * m


def residual_block_kernel(x_ref, w1_ref, b1_ref, w2_ref, b2_ref, o_ref):
    x = x_ref[...].astype(jnp.float32)          # (TB, D) tile, f32 for VPU math
    xb = x.astype(jnp.bfloat16)                 # bf16 into the MXU

    # ---- Linear 1 (bf16 MXU, f32 accumulate) ----
    y1 = jnp.dot(xb, w1_ref[...], preferred_element_type=jnp.float32) + b1_ref[...]
    # ---- Swish ----
    h = jax.nn.sigmoid(y1) * y1
    # ---- Linear 2 ----
    y2 = jnp.dot(h.astype(jnp.bfloat16), w2_ref[...],
                 preferred_element_type=jnp.float32) + b2_ref[...]
    # ---- residual add + Swish ----
    z = x + y2
    o_ref[...] = (jax.nn.sigmoid(z) * z).astype(o_ref.dtype)


@functools.partial(jax.jit, static_argnames=())
def residual_block(x, w1, b1, w2, b2):
    """x: [B, D]; w1, w2: [D, D] ([in, out]); b1, b2: [1, D]. Returns [B, D]."""
    B, D = x.shape

    # ---- lane/sublane friendly padded shapes ----
    Dp = _round_up(D, 128)                      # lane-dense feature dim
    TB = 256 if B >= 256 else _round_up(max(B, 8), 8)   # batch tile (sublane multiple)
    Bp = _round_up(B, TB)
    pad_b, pad_d = Bp - B, Dp - D

    x_p = jnp.pad(x, ((0, pad_b), (0, pad_d)))
    w1_p = jnp.pad(w1, ((0, pad_d), (0, pad_d))).astype(jnp.bfloat16)
    w2_p = jnp.pad(w2, ((0, pad_d), (0, pad_d))).astype(jnp.bfloat16)
    b1_p = jnp.pad(b1, ((0, 0), (0, pad_d))).astype(jnp.float32)
    b2_p = jnp.pad(b2, ((0, 0), (0, pad_d))).astype(jnp.float32)

    grid = (Bp // TB,)

    # VMEM budget: 2x double-buffered x/out tiles (f32) + resident bf16 weights
    # (BlockSpec still allocates 2 buffers for them) + biases, with headroom.
    tile_bytes = 2 * 2 * TB * Dp * 4
    weight_bytes = 2 * 2 * Dp * Dp * 2
    bias_bytes = 2 * 2 * Dp * 4
    vmem_limit = min(64 << 20, max(32 << 20, 2 * (tile_bytes + weight_bytes + bias_bytes)))

    cost = pl.CostEstimate(
        flops=4 * Bp * Dp * Dp,                 # two (Bp,Dp)x(Dp,Dp) matmuls
        transcendentals=2 * Bp * Dp,            # two sigmoids
        bytes_accessed=(Bp * Dp * 4) * 2 + 2 * Dp * Dp * 2 + 2 * Dp * 4,
    )

    out_p = pl.pallas_call(
        residual_block_kernel,
        out_shape=jax.ShapeDtypeStruct((Bp, Dp), x.dtype),
        grid_spec=pltpu.PrefetchScalarGridSpec(
            num_scalar_prefetch=0,
            grid=grid,
            in_specs=[
                pl.BlockSpec((TB, Dp), lambda i: (i, 0)),   # x: streamed per tile
                pl.BlockSpec((Dp, Dp), lambda i: (0, 0)),   # w1: VMEM-resident
                pl.BlockSpec((1, Dp), lambda i: (0, 0)),    # b1: resident
                pl.BlockSpec((Dp, Dp), lambda i: (0, 0)),   # w2: resident
                pl.BlockSpec((1, Dp), lambda i: (0, 0)),    # b2: resident
            ],
            out_specs=pl.BlockSpec((TB, Dp), lambda i: (i, 0)),
        ),
        compiler_params=pltpu.CompilerParams(
            dimension_semantics=("parallel",),              # shard batch tiles across TCs (v7x)
            vmem_limit_bytes=int(vmem_limit),
        ),
        cost_estimate=cost,
    )(x_p, w1_p, b1_p, w2_p, b2_p)

    return out_p[:B, :D]
    # TODO(synk): for very large D (2*D^2 bf16 weights no longer fit VMEM, ~Dp>=4k on v7x),
    # switch to a K-tiled variant with an f32 accumulator + pl.when init/finalize.


def init_params(key, dim):
    """Deterministic init mimicking nn.Linear default (uniform(-1/sqrt(in), 1/sqrt(in)))."""
    k1, k2, k3, k4 = jax.random.split(key, 4)
    bound = 1.0 / jnp.sqrt(dim)
    # Weights stored pre-transposed: [in, out] so kernel does x @ W.
    w1 = jax.random.uniform(k1, (dim, dim), jnp.float32, -bound, bound)
    b1 = jax.random.uniform(k2, (1, dim), jnp.float32, -bound, bound)
    w2 = jax.random.uniform(k3, (dim, dim), jnp.float32, -bound, bound)
    b2 = jax.random.uniform(k4, (1, dim), jnp.float32, -bound, bound)
    return w1, b1, w2, b2


def residual_block_ref(x, w1, b1, w2, b2):
    """Pure-JAX reference mirroring the kernel's bf16-matmul / f32-elementwise math."""
    xb = x.astype(jnp.bfloat16)
    w1b = w1.astype(jnp.bfloat16)
    w2b = w2.astype(jnp.bfloat16)
    y1 = jnp.dot(xb, w1b, preferred_element_type=jnp.float32) + b1
    h = jax.nn.sigmoid(y1) * y1
    y2 = jnp.dot(h.astype(jnp.bfloat16), w2b, preferred_element_type=jnp.float32) + b2
    z = x + y2
    return jax.nn.sigmoid(z) * z


if __name__ == "__main__":
    key = jax.random.PRNGKey(0)
    kx, kp = jax.random.split(key)

    # Small but lane-dense shapes for a Linear(dim, dim) residual block.
    batch, dim = 512, 128
    x = jax.random.normal(kx, (batch, dim), jnp.float32)
    w1, b1, w2, b2 = init_params(kp, dim)

    out = residual_block(x, w1, b1, w2, b2)
    out = jax.block_until_ready(out)

    ref = residual_block_ref(x, w1, b1, w2, b2)
    assert out.shape == (batch, dim)
    assert jnp.allclose(out, ref, atol=2e-3, rtol=2e-3), (
        float(jnp.max(jnp.abs(out - ref))))

    print("KERNEL_OK")
</pallas_src>

<mosaic_0001>
module attributes {stable_mosaic.version = 11 : i64} {
  func.func @residual_block_kernel(%arg0: i32, %arg1: memref<256x128xf32, #tpu.memory_space<vmem>>, %arg2: memref<128x128xbf16, #tpu.memory_space<vmem>>, %arg3: memref<1x128xf32, #tpu.memory_space<vmem>>, %arg4: memref<128x128xbf16, #tpu.memory_space<vmem>>, %arg5: memref<1x128xf32, #tpu.memory_space<vmem>>, %arg6: memref<256x128xf32, #tpu.memory_space<vmem>>) attributes {dimension_semantics = [#tpu.dimension_semantics<parallel>], iteration_bounds = array<i64: 2>, scalar_prefetch = 0 : i64, scratch_operands = 0 : i64, tpu.core_type = #tpu.core_type<tc>, window_params = [{transform_indices = @transform_0, window_bounds = array<i64: 256, 128>}, {pipeline_mode = #tpu.pipeline_mode<synchronous>, transform_indices = @transform_1, window_bounds = array<i64: 128, 128>}, {pipeline_mode = #tpu.pipeline_mode<synchronous>, transform_indices = @transform_2, window_bounds = array<i64: 1, 128>}, {pipeline_mode = #tpu.pipeline_mode<synchronous>, transform_indices = @transform_3, window_bounds = array<i64: 128, 128>}, {pipeline_mode = #tpu.pipeline_mode<synchronous>, transform_indices = @transform_4, window_bounds = array<i64: 1, 128>}, {transform_indices = @transform_5, window_bounds = array<i64: 256, 128>}]} {
    %c0 = arith.constant 0 : index
    %c0_0 = arith.constant 0 : index
    %0 = vector.load %arg1[%c0, %c0_0] : memref<256x128xf32, #tpu.memory_space<vmem>>, vector<256x128xf32>
    %1 = arith.truncf %0 : vector<256x128xf32> to vector<256x128xbf16>
    %c0_1 = arith.constant 0 : index
    %c0_2 = arith.constant 0 : index
    %2 = vector.load %arg2[%c0_1, %c0_2] : memref<128x128xbf16, #tpu.memory_space<vmem>>, vector<128x128xbf16>
    %cst = arith.constant dense<0.000000e+00> : vector<256x128xf32>
    %3 = tpu.matmul %1, %2, %cst {dimension_numbers = #tpu.dot_dimension_numbers<[1], [0], [0], [1], [0, 0, 1, 1], [], []>} : vector<256x128xbf16>, vector<128x128xbf16>, vector<256x128xf32> -> vector<256x128xf32>
    %c0_3 = arith.constant 0 : index
    %c0_4 = arith.constant 0 : index
    %4 = vector.load %arg3[%c0_3, %c0_4] : memref<1x128xf32, #tpu.memory_space<vmem>>, vector<1x128xf32>
    %5 = vector.broadcast %4 : vector<1x128xf32> to vector<256x128xf32>
    %6 = arith.addf %3, %5 : vector<256x128xf32>
    %7 = arith.negf %6 : vector<256x128xf32>
    %8 = math.exp %7 : vector<256x128xf32>
    %cst_5 = arith.constant 1.000000e+00 : f32
    %9 = vector.broadcast %cst_5 : f32 to vector<256x128xf32>
    %10 = arith.addf %9, %8 : vector<256x128xf32>
    %11 = arith.divf %9, %10 : vector<256x128xf32>
    %12 = arith.mulf %11, %6 : vector<256x128xf32>
    %13 = arith.truncf %12 : vector<256x128xf32> to vector<256x128xbf16>
    %c0_6 = arith.constant 0 : index
    %c0_7 = arith.constant 0 : index
    %14 = vector.load %arg4[%c0_6, %c0_7] : memref<128x128xbf16, #tpu.memory_space<vmem>>, vector<128x128xbf16>
    %cst_8 = arith.constant dense<0.000000e+00> : vector<256x128xf32>
    %15 = tpu.matmul %13, %14, %cst_8 {dimension_numbers = #tpu.dot_dimension_numbers<[1], [0], [0], [1], [0, 0, 1, 1], [], []>} : vector<256x128xbf16>, vector<128x128xbf16>, vector<256x128xf32> -> vector<256x128xf32>
    %c0_9 = arith.constant 0 : index
    %c0_10 = arith.constant 0 : index
    %16 = vector.load %arg5[%c0_9, %c0_10] : memref<1x128xf32, #tpu.memory_space<vmem>>, vector<1x128xf32>
    %17 = vector.broadcast %16 : vector<1x128xf32> to vector<256x128xf32>
    %18 = arith.addf %15, %17 : vector<256x128xf32>
    %19 = arith.addf %0, %18 : vector<256x128xf32>
    %20 = arith.negf %19 : vector<256x128xf32>
    %21 = math.exp %20 : vector<256x128xf32>
    %cst_11 = arith.constant 1.000000e+00 : f32
    %22 = vector.broadcast %cst_11 : f32 to vector<256x128xf32>
    %23 = arith.addf %22, %21 : vector<256x128xf32>
    %24 = arith.divf %22, %23 : vector<256x128xf32>
    %25 = arith.mulf %24, %19 : vector<256x128xf32>
    %c0_12 = arith.constant 0 : index
    %c0_13 = arith.constant 0 : index
    %26 = vector.load %arg6[%c0_12, %c0_13] : memref<256x128xf32, #tpu.memory_space<vmem>>, vector<256x128xf32>
    tpu.vector_store %arg6[%c0_12, %c0_13], %25 {strides = array<i32>} : memref<256x128xf32, #tpu.memory_space<vmem>>, vector<256x128xf32>,
    return
  }
  func.func @transform_0(%arg0: i32) -> (i32, i32) {
    %c0_i32 = arith.constant 0 : i32
    %c0_i32_0 = arith.constant 0 : i32
    return %arg0, %c0_i32 : i32, i32
  }
  func.func @transform_1(%arg0: i32) -> (i32, i32) {
    %c0_i32 = arith.constant 0 : i32
    %c0_i32_0 = arith.constant 0 : i32
    %c0_i32_1 = arith.constant 0 : i32
    return %c0_i32, %c0_i32_0 : i32, i32
  }
  func.func @transform_2(%arg0: i32) -> (i32, i32) {
    %c0_i32 = arith.constant 0 : i32
    %c0_i32_0 = arith.constant 0 : i32
    %c0_i32_1 = arith.constant 0 : i32
    return %c0_i32, %c0_i32_0 : i32, i32
  }
  func.func @transform_3(%arg0: i32) -> (i32, i32) {
    %c0_i32 = arith.constant 0 : i32
    %c0_i32_0 = arith.constant 0 : i32
    %c0_i32_1 = arith.constant 0 : i32
    return %c0_i32, %c0_i32_0 : i32, i32
  }
  func.func @transform_4(%arg0: i32) -> (i32, i32) {
    %c0_i32 = arith.constant 0 : i32
    %c0_i32_0 = arith.constant 0 : i32
    %c0_i32_1 = arith.constant 0 : i32
    return %c0_i32, %c0_i32_0 : i32, i32
  }
  func.func @transform_5(%arg0: i32) -> (i32, i32) {
    %c0_i32 = arith.constant 0 : i32
    %c0_i32_0 = arith.constant 0 : i32
    return %arg0, %c0_i32 : i32, i32
  }
}

</mosaic_0001>

<bundles_post_ra>
// kernel: residual_block.1
= control target key start
LH: loop header
LB: loop body
LE: loop exit
PB: predicated region body
PF: predicated region fallthrough
CT: control target
= control target key end

     0   :  { %10 = vsyncpa [#allocation3], 0  ;;  %s2774_s0 = inlined_call_operand.hbm [shape: f32[512,128], index: 0, kind: input, shape index: {}]   ;;  %s2775_s1 = inlined_call_operand.vmem [shape: bf16[128,128], index: 1, kind: input, shape index: {}]   ;;  %s2776_s2 = inlined_call_operand.vmem [shape: f32[1,128], index: 2, kind: input, shape index: {}]   ;;  %s2777_s3 = inlined_call_operand.vmem [shape: bf16[128,128], index: 3, kind: input, shape index: {}]   ;;  %s2778_s4 = inlined_call_operand.vmem [shape: f32[1,128], index: 4, kind: input, shape index: {}]   ;;  %s2779_s5 = inlined_call_operand.hbm [shape: f32[512,128], index: 5, kind: output, shape index: {}]  }
   0x1   :  { %12 = vsyncpa [#allocation3 + $0x1], 0 }
   0x2   :  { %13 = vsyncpa [#allocation4], 0 }
   0x3   :  { %15 = vsyncpa [#allocation4 + $0x1], 0  ;;  %s2080_s18 = smov 0   ;;  %s2082_s19 = smov 0  }
   0x4   :  { %s2084_s20 = smov 0   ;;  %s2086_s21 = smov 0  }
   0x5 LB: > { %s2101_s22 = sadd.s32 4294967295, %s2042_s21   ;;  %s1373_s23 = sadd.s32 4294967294, %s2042_s21   ;;  %s2042_s21 = sphi %s2086_s21, %s2794_s21   ;;  %s2038_s20 = sphi %s2084_s20, %s2793_s20   ;;  %s2034_s19 = sphi %s2082_s19, %s2792_s19   ;;  %s2030_s18 = sphi %s2080_s18, %s2791_s18  }
   0x6   : > { %s2105_s24 = sadd.s32 1, %s2042_s21   ;;  %s28_s25 = sadd.s32 1, %s2038_s20 }
   0x7   : > { %s25_s26 = ssub.s32 %s2042_s21, %s2105_s24  ;;  %p35_p0 = scmp.ne.s32.totalorder %s2038_s20, %s2034_s19 }
   0x8   : > { %p26_p1 = scmp.eq.s32.totalorder %s25_s26, 0  ;;  %p36_p2 = scmp.eq.s32.totalorder %s2042_s21, 0 }
   0x9   : > { %p41_p3 = scmp.ne.s32.totalorder %s2034_s19, %s2030_s18  ;;  %p42_p4 = scmp.eq.s32.totalorder %s2101_s22, 0 }
   0xa   : > { %s2117_s27 = scalar_select %p26_p1, %s2038_s20, %s28_s25  }
   0xb   : > { %p2119_p5 = por %p36_p2, %p35_p0  ;;  %p2123_p6 = por %p42_p4, %p41_p3 }
   0xc   : > { %p149_p7 = scmp.eq.s32.totalorder %s2101_s22, 1  ;;  %p155_p8 = scmp.eq.s32.totalorder %s1373_s23, 1 }
   0xd   : > { %s2783_s29 = scalar_select %p2123_p6, 1, 0 }
   0xe   : > { %p1627_p10 = scmp.lt.s32.totalorder %s2042_s21, 2  ;;  %p2130_p11 = por %p149_p7, %p35_p0 }
   0xf   : > { %p2134_p12 = por %p155_p8, %p41_p3  ;;  %s187_s7 = sand.u32 1, %s2038_s20  }
  0x10   : > { %s2784_s30 = scalar_select %p2130_p11, 1, 0 }
  0x11   : > { %s2785_s6 = scalar_select %p2134_p12, 1, 0 }
  0x12   : > { %s1469_s8 = sshll.u32 %s2042_s21, 12  ;;  %s1376_s9 = sshll.u32 %s187_s7, 8 }
  0x13   : > { %s2143_s12 = scalar_lea.hbm %s2774_s0, %s1469_s8  ;;  %s191_s13 = scalar_lea.vmem [#allocation2], %s1376_s9 }
  0x14   : > { %s198_s14 = sshll.u32 %s191_s13, 4  ;;  %p2147_p13 = pnand %p1627_p10, %p2119_p5  ;;  %s2151_s14 = int_to_ptr.vmem [resolvable:$true] %s198_s14 }
  0x15   : > { %s2153_s16 = scalar_lea.sflag [#allocation3], %s187_s7  ;;  %s1950_s17 = scalar_lea.hbm %s2143_s12, 4096 }
  0x16   : > { %p1951_p0 = scmp.ne.s32.totalorder %s2143_s12, %s1950_s17  ;;  %p1952_p1 = pneg %p2147_p13 }
  0x17   : > { %s1955_s26 = scalar_lea.hbm %s2774_s0, 8192  ;;  %p1956_p4 = scmp.lt.s32.totalorder %s2143_s12, %s2774_s0 }
  0x18   : > { %p1953_p2 = pnand %p1952_p1, %p1951_p0  ;;  %p1957_p5 = scmp.lt.s32.totalorder %s1955_s26, %s1950_s17 }
  0x1a   : > { %p1954_p3 = pneg %p1953_p2  ;;  %p1958_p7 = por %p1957_p5, %p1956_p4 }
  0x1c   : > { %p1959_p8 = pnand %p1958_p7, %p1954_p3 }
  0x1e   : > { %1962 = shalt.err (!%p1959_p8)
}
  0x1f   : > { %s1963_s7 = scalar_lea.vmem %s2151_s14, 4096  ;;  %s2044_s9 = smov [#allocation2]  }
  0x20   : > { %p1964_p10 = scmp.ne.s32.totalorder %s2151_s14, %s1963_s7  ;;  %s1968_s10 = sshll.u32 %s2044_s9, 4  ;;  %s1969_s10 = int_to_ptr.vmem [resolvable:$false] %s1968_s10 }
  0x21   : > { %s1970_s11 = scalar_lea.vmem %s1969_s10, 8192  ;;  %p1971_p2 = scmp.lt.s32.totalorder %s2151_s14, %s1969_s10 }
  0x22   : > { %p1966_p9 = pnand %p1964_p10, %p1952_p1  ;;  %p1972_p12 = scmp.lt.s32.totalorder %s1970_s11, %s1963_s7 }
  0x24   : > { %p1967_p0 = pneg %p1966_p9  ;;  %p1973_p11 = por %p1972_p12, %p1971_p2 }
  0x26   : > { %p1974_p6 = pnand %p1973_p11, %p1967_p0 }
  0x28   : > { %1977 = shalt.err (!%p1974_p6)
}
  0x29   : > { %s2045_s13 = smov 128   ;;  %s2046_s17 = smov 8  }
  0x2a   : > { %1622 = dma.hbm_to_vmem [thread:$0]  (!%p2147_p13), %s2143_s12, 4096, %s2151_s14, %s2153_s16, %s2045_s13, %s2045_s13, %s2046_s17  }
  0x2b   : > { %p1379_p9 = scmp.ge.s32.totalorder %s2042_s21, 1  ;;  %p206_p1 = scmp.lt.s32.totalorder %s2042_s21, 3 }
  0x2d   : > { %p207_p3 = pnand %p1379_p9, %p206_p1 }
  0x2e   : > { %s2177_s23 = sand.u32 (!%p207_p3), 1, %s2034_s19   ;;  %p2787_p6 = scmp.ne.s32.totalorder (!%p207_p3), %s2783_s29, 0 }
  0x2f   : > { %210 = sbr.rel (%p207_p3) target bundleno = 633 (0x279), region = 40  ;;  %s1380_s25 = sshll.u32 (!%p207_p3), %s2177_s23, 8 }
  0x30   : > { %s213_s26 = scalar_lea.sflag (!%p207_p3), [#allocation3], %s2177_s23  ;;  %s2183_s28 = scalar_lea.vmem (!%p207_p3), [#allocation2], %s1380_s25 }
  0x34   : > { %2021 = dma.done.wait (%p2787_p6), %s213_s26, 4096  }
  0x35   : > { %2023 = vsyncadd (%p2787_p6), %s213_s26, 4294963200  ;;  %v1665_v0 = vld [vmem:[%s2775_s1 + $0x38] sm:$0xff]   ;;  %v1666_v1 = vld [vmem:[%s2775_s1 + $0x30] sm:$0xff]   ;;  %s2589_s13 = scalar_lea.vmem [#allocation5], %s1380_s25  ;;  %s1470_s25 = sshll.u32 %s2101_s22, 12 }
  0x36   : > { %1519 = vmatprep.subr.bf16.mxu0 %v1665_v0  ;;  %v1667_v2 = vld [vmem:[%s2775_s1 + $0x28] sm:$0xff]   ;;  %v1668_v3 = vld [vmem:[%s2775_s1 + $0x20] sm:$0xff]   ;;  %v1669_v7 = vld [vmem:[%s2775_s1 + $0x18] sm:$0xff]   ;;  %s2726_s12 = scalar_lea.hbm %s2779_s5, %s1470_s25  ;;  %s1287_s22 = scalar_lea.sflag [#allocation4], %s2177_s23 }
  0x37   : > { %1520 = vmatpush3.bf16.msra.mxu0 %v1665_v0  ;;  %v2202_v4 = vld [vmem:[%s2183_s28] sm:$0xff]  ;;  %v2205_v5 = vld [vmem:[%s2183_s28 + $0x8] sm:$0xff]  ;;  %v1670_v8 = vld [vmem:[%s2775_s1 + $0x10] sm:$0xff]   ;;  %p2788_p12 = scmp.ne.s32.totalorder %s2784_s30, 0  ;;  %s2047_s15 = smov [#allocation5]  }
  0x38   : > { %1521 = vmatprep.subr.bf16.mxu0 %v1666_v1  ;;  %v278_v6 = vpack.c.bf16 %v2205_v5, %v2202_v4  ;;  %v1671_v9 = vld [vmem:[%s2775_s1 + $0x8] sm:$0xff]   ;;  %v1672_v10 = vld [vmem:[%s2775_s1] sm:$0xff]   ;;  %v2222_v11 = vld [vmem:[%s2183_s28 + $0x10] sm:$0xff]  ;;  %s1982_s16 = sshll.u32 %s2047_s15, 4  ;;  %s1983_s16 = int_to_ptr.vmem [resolvable:$false] %s1982_s16 }
  0x39   : > { %v2225_v12 = vld [vmem:[%s2183_s28 + $0x18] sm:$0xff]  ;;  %v2228_v13 = vld [vmem:[%s2183_s28 + $0x20] sm:$0xff]  ;;  %v2231_v14 = vld [vmem:[%s2183_s28 + $0x28] sm:$0xff]  ;;  %s1984_s8 = scalar_lea.vmem %s1983_s16, 8192 }
  0x3a   : > { %1535 = vmatprep.mubr.bf16.mxu0 %v278_v6  ;;  %v279_v15 = vpack.c.bf16 %v2225_v12, %v2222_v11  ;;  %v280_v16 = vpack.c.bf16 %v2231_v14, %v2228_v13  ;;  %v2238_v17 = vld [vmem:[%s2183_s28 + $0x30] sm:$0xff]  ;;  %v2241_v18 = vld [vmem:[%s2183_s28 + $0x38] sm:$0xff]  ;;  %v2244_v19 = vld [vmem:[%s2183_s28 + $0x40] sm:$0xff] }
  0x3b   : > { %1522 = vmatpush3.bf16.msra.mxu0 %v1666_v1  ;;  %v2247_v20 = vld [vmem:[%s2183_s28 + $0x48] sm:$0xff]  ;;  %v281_v21 = vpack.c.bf16 %v2241_v18, %v2238_v17  ;;  %v2254_v23 = vld [vmem:[%s2183_s28 + $0x50] sm:$0xff]  ;;  %v2257_v24 = vld [vmem:[%s2183_s28 + $0x58] sm:$0xff] }
  0x3c   : > { %1523 = vmatprep.subr.bf16.mxu0 %v1667_v2  ;;  %v282_v22 = vpack.c.bf16 %v2247_v20, %v2244_v19  ;;  %v2260_v25 = vld [vmem:[%s2183_s28 + $0x60] sm:$0xff]  ;;  %v2263_v26 = vld [vmem:[%s2183_s28 + $0x68] sm:$0xff]  ;;  %v283_v27 = vpack.c.bf16 %v2257_v24, %v2254_v23  ;;  %v2270_v29 = vld [vmem:[%s2183_s28 + $0x70] sm:$0xff] }
  0x3d   : > { %v284_v28 = vpack.c.bf16 %v2263_v26, %v2260_v25  ;;  %v2273_v30 = vld [vmem:[%s2183_s28 + $0x78] sm:$0xff]  ;;  %v2276_v31 = vld [vmem:[%s2183_s28 + $0x80] sm:$0xff]  ;;  %v263_v32 = vld [vmem:[%s2183_s28 + $0x88] sm:$0xff] }
  0x3e   : > { %v285_v33 = vpack.c.bf16 %v2273_v30, %v2270_v29  ;;  %v286_v34 = vpack.c.bf16 %v263_v32, %v2276_v31  ;;  %v2283_v35 = vld [vmem:[%s2183_s28 + $0x90] sm:$0xff]  ;;  %v2286_v36 = vld [vmem:[%s2183_s28 + $0x98] sm:$0xff]  ;;  %v266_v37 = vld [vmem:[%s2183_s28 + $0xa0] sm:$0xff] }
  0x3f   : > { %1524 = vmatpush3.bf16.msra.mxu0 %v1667_v2  ;;  %v267_v38 = vld [vmem:[%s2183_s28 + $0xa8] sm:$0xff]  ;;  %v287_v39 = vpack.c.bf16 %v2286_v36, %v2283_v35  ;;  %v268_v41 = vld [vmem:[%s2183_s28 + $0xb0] sm:$0xff]  ;;  %v269_v42 = vld [vmem:[%s2183_s28 + $0xb8] sm:$0xff] }
  0x40   : > { %1525 = vmatprep.subr.bf16.mxu0 %v1668_v3  ;;  %v288_v40 = vpack.c.bf16 %v267_v38, %v266_v37  ;;  %v270_v43 = vld [vmem:[%s2183_s28 + $0xc0] sm:$0xff]  ;;  %v271_v44 = vld [vmem:[%s2183_s28 + $0xc8] sm:$0xff]  ;;  %v289_v45 = vpack.c.bf16 %v269_v42, %v268_v41  ;;  %v272_v47 = vld [vmem:[%s2183_s28 + $0xd0] sm:$0xff] }
  0x41   : > { %v290_v46 = vpack.c.bf16 %v271_v44, %v270_v43  ;;  %v273_v48 = vld [vmem:[%s2183_s28 + $0xd8] sm:$0xff]  ;;  %v274_v49 = vld [vmem:[%s2183_s28 + $0xe0] sm:$0xff]  ;;  %v275_v50 = vld [vmem:[%s2183_s28 + $0xe8] sm:$0xff] }
  0x42   : > { %v291_v51 = vpack.c.bf16 %v273_v48, %v272_v47  ;;  %v292_v52 = vpack.c.bf16 %v275_v50, %v274_v49  ;;  %v276_v53 = vld [vmem:[%s2183_s28 + $0xf0] sm:$0xff]  ;;  %v277_v54 = vld [vmem:[%s2183_s28 + $0xf8] sm:$0xff]  ;;  %v1675_v58 = vld [vmem:[%s2777_s3 + $0x28] sm:$0xff]  }
  0x43   : > { %1526 = vmatpush3.bf16.msra.mxu0 %v1668_v3  ;;  %v293_v55 = vpack.c.bf16 %v277_v54, %v276_v53  ;;  %v1673_v56 = vld [vmem:[%s2777_s3 + $0x38] sm:$0xff]   ;;  %v1674_v57 = vld [vmem:[%s2777_s3 + $0x30] sm:$0xff]   ;;  %v1676_v59 = vld [vmem:[%s2777_s3 + $0x20] sm:$0xff]  }
  0x44   : > { %1527 = vmatprep.subr.bf16.mxu0 %v1669_v7  ;;  %1567 = vmatprep.subr.bf16.mxu1 %v1673_v56  ;;  %v1677_v60 = vld [vmem:[%s2777_s3 + $0x18] sm:$0xff]   ;;  %v1678_v61 = vld [vmem:[%s2777_s3 + $0x10] sm:$0xff]   ;;  %v1679_v62 = vld [vmem:[%s2777_s3 + $0x8] sm:$0xff]  }
  0x45   : > { %1568 = vmatpush3.bf16.msra.mxu1 %v1673_v56  ;;  %v1680_v63 = vld [vmem:[%s2777_s3] sm:$0xff]  }
  0x46   : > { %1569 = vmatprep.subr.bf16.mxu1 %v1674_v57  ;;  %v2329_v0 = vld [vmem:[%s2776_s2] ss:$0 sm:$0xff] }
  0x47   : > { %1528 = vmatpush3.bf16.msra.mxu0 %v1669_v7 }
  0x48   : > { %1529 = vmatprep.subr.bf16.mxu0 %v1670_v8 }
  0x49   : > { %1570 = vmatpush3.bf16.msra.mxu1 %v1674_v57 }
  0x4a   : > { %1571 = vmatprep.subr.bf16.mxu1 %v1675_v58 }
  0x4b   : > { %1530 = vmatpush3.bf16.msra.mxu0 %v1670_v8 }
  0x4c   : > { %1531 = vmatprep.subr.bf16.mxu0 %v1671_v9 }
  0x4d   : > { %1572 = vmatpush3.bf16.msra.mxu1 %v1675_v58 }
  0x4e   : > { %1573 = vmatprep.subr.bf16.mxu1 %v1676_v59 }
  0x4f   : > { %1532 = vmatpush3.bf16.msra.mxu0 %v1671_v9 }
  0x50   : > { %1533 = vmatprep.subr.bf16.mxu0 %v1672_v10 }
  0x51   : > { %1574 = vmatpush3.bf16.msra.mxu1 %v1676_v59 }
  0x52   : > { %1575 = vmatprep.subr.bf16.mxu1 %v1677_v60 }
  0x53   : > { %1534 = vmatpush3.bf16.msra.mxu0 %v1672_v10 }
  0x55   : > { %1576 = vmatpush3.bf16.msra.mxu1 %v1677_v60 }
  0x56   : > { %1536 = vmatmul.mubr.bf16.vlgmr.msra.gmra.mxu0 %v279_v15  ;;  %1577 = vmatprep.subr.bf16.mxu1 %v1678_v61 }
  0x57   : > { %1539 = vmatprep.mubr.bf16.mxu0 %v280_v16 }
  0x59   : > { %1578 = vmatpush3.bf16.msra.mxu1 %v1678_v61 }
  0x5a   : > { %1579 = vmatprep.subr.bf16.mxu1 %v1679_v62 }
  0x5d   : > { %1580 = vmatpush3.bf16.msra.mxu1 %v1679_v62 }
  0x5e   : > { %1540 = vmatmul.mubr.bf16.gmra.mxu0 %v281_v21  ;;  %1581 = vmatprep.subr.bf16.mxu1 %v1680_v63 }
  0x5f   : > { %1543 = vmatprep.mubr.bf16.mxu0 %v282_v22 }
  0x61   : > { %1582 = vmatpush3.bf16.msra.mxu1 %v1680_v63 }
  0x66   : > { %1544 = vmatmul.mubr.bf16.gmra.mxu0 %v283_v27 }
  0x67   : > { %1547 = vmatprep.mubr.bf16.mxu0 %v284_v28 }
  0x6e   : > { %1548 = vmatmul.mubr.bf16.gmra.mxu0 %v285_v33 }
  0x6f   : > { %1551 = vmatprep.mubr.bf16.mxu0 %v286_v34 }
  0x76   : > { %1552 = vmatmul.mubr.bf16.gmra.mxu0 %v287_v39 }
  0x77   : > { %1555 = vmatprep.mubr.bf16.mxu0 %v288_v40 }
  0x7e   : > { %1556 = vmatmul.mubr.bf16.gmra.mxu0 %v289_v45 }
  0x7f   : > { %1559 = vmatprep.mubr.bf16.mxu0 %v290_v46 }
  0x86   : > { %1560 = vmatmul.mubr.bf16.gmra.mxu0 %v291_v51 }
  0x87   : > { %1563 = vmatprep.mubr.bf16.mxu0 %v292_v52 }
  0x8e   : > { %1564 = vmatmul.mubr.bf16.gmra.mxu0 %v293_v55 }
 0x116   : > { %v1537_v1 = vpop.f32.mrf.mxu0 }
 0x117   : > { %v2332_v2 = vadd.f32 %v1537_v1, %v2329_v0 }
 0x118   : > { %v399_v3 = vpop.f32.mrf.mxu0 }
 0x119   : > { %v1393_v6 = vmul.f32 -1.442695, %v2332_v2  ;;  %v2336_v7 = vadd.f32 %v2329_v0, %v399_v3 }
 0x11a   : > { %v1538_v8 = vpop.f32.mrf.mxu0 }
 0x11b   : > { %1681 = vpow2.f32 %v1393_v6  ;;  %v1391_v9 = vmul.f32 -1.442695, %v2336_v7  ;;  %v2340_v10 = vadd.f32 %v1538_v8, %v2329_v0 }
 0x11c   : > { %v402_v15 = vpop.f32.mrf.mxu0 }
 0x11d   : > { %1683 = vpow2.f32 %v1391_v9  ;;  %v1394_v16 = vmul.f32 -1.442695, %v2340_v10  ;;  %v2344_v21 = vadd.f32 %v2329_v0, %v402_v15 }
 0x11e   : > { %v1541_v22 = vpop.f32.mrf.mxu0 }
 0x11f   : > { %1685 = vpow2.f32 %v1394_v16  ;;  %v1392_v27 = vmul.f32 -1.442695, %v2344_v21  ;;  %v2348_v28 = vadd.f32 %v1541_v22, %v2329_v0 }
 0x120   : > { %v415_v32 = vpop.f32.mrf.mxu0 }
 0x121   : > { %1687 = vpow2.f32 %v1392_v27  ;;  %v1397_v33 = vmul.f32 -1.442695, %v2348_v28  ;;  %v2352_v34 = vadd.f32 %v2329_v0, %v415_v32 }
 0x122   : > { %v1542_v37 = vpop.f32.mrf.mxu0 }
 0x123   : > { %1689 = vpow2.f32 %v1397_v33  ;;  %v1395_v38 = vmul.f32 -1.442695, %v2352_v34  ;;  %v2356_v39 = vadd.f32 %v1542_v37, %v2329_v0 }
 0x124   : > { %v418_v40 = vpop.f32.mrf.mxu0 }
 0x125   : > { %1691 = vpow2.f32 %v1395_v38  ;;  %v1398_v41 = vmul.f32 -1.442695, %v2356_v39  ;;  %v2360_v42 = vadd.f32 %v2329_v0, %v418_v40 }
 0x126   : > { %v1545_v43 = vpop.f32.mrf.mxu0 }
 0x127   : > { %1693 = vpow2.f32 %v1398_v41  ;;  %v1396_v44 = vmul.f32 -1.442695, %v2360_v42  ;;  %v2364_v45 = vadd.f32 %v1545_v43, %v2329_v0 }
 0x128   : > { %v1682_v46 = vpop.eup %1681  ;;  %v431_v47 = vpop.f32.mrf.mxu0 }
 0x129   : > { %v624_v48 = vadd.f32 1.0, %v1682_v46  ;;  %1695 = vpow2.f32 %v1396_v44  ;;  %v1401_v49 = vmul.f32 -1.442695, %v2364_v45  ;;  %v2368_v50 = vadd.f32 %v2329_v0, %v431_v47 }
 0x12a   : > { %v1684_v51 = vpop.eup %1683  ;;  %v1546_v52 = vpop.f32.mrf.mxu0 }
 0x12b   : > { %1697 = vrcp.f32 %v624_v48  ;;  %v622_v53 = vadd.f32 1.0, %v1684_v51  ;;  %v1399_v54 = vmul.f32 -1.442695, %v2368_v50  ;;  %v2372_v55 = vadd.f32 %v1546_v52, %v2329_v0 }
 0x12c   : > { %v1686_v56 = vpop.eup %1685  ;;  %1699 = vpow2.f32 %v1401_v49  ;;  %v434_v57 = vpop.f32.mrf.mxu0 }
 0x12d   : > { %1701 = vrcp.f32 %v622_v53  ;;  %v625_v58 = vadd.f32 1.0, %v1686_v56  ;;  %v1402_v59 = vmul.f32 -1.442695, %v2372_v55  ;;  %v2376_v60 = vadd.f32 %v2329_v0, %v434_v57 }
 0x12e   : > { %v1688_v61 = vpop.eup %1687  ;;  %1703 = vpow2.f32 %v1399_v54  ;;  %v1549_v62 = vpop.f32.mrf.mxu0 }
 0x12f   : > { %1705 = vrcp.f32 %v625_v58  ;;  %v623_v63 = vadd.f32 1.0, %v1688_v61  ;;  %v1400_v1 = vmul.f32 -1.442695, %v2376_v60  ;;  %v2380_v3 = vadd.f32 %v1549_v62, %v2329_v0 }
 0x130   : > { %v1690_v6 = vpop.eup %1689  ;;  %1707 = vpow2.f32 %v1402_v59  ;;  %v447_v8 = vpop.f32.mrf.mxu0 }
 0x131   : > { %1709 = vrcp.f32 %v623_v63  ;;  %v628_v9 = vadd.f32 1.0, %v1690_v6  ;;  %v1405_v15 = vmul.f32 -1.442695, %v2380_v3  ;;  %v2384_v16 = vadd.f32 %v2329_v0, %v447_v8 }
 0x132   : > { %v1692_v22 = vpop.eup %1691  ;;  %1711 = vpow2.f32 %v1400_v1  ;;  %v1550_v27 = vpop.f32.mrf.mxu0 }
 0x133   : > { %1713 = vrcp.f32 %v628_v9  ;;  %v626_v32 = vadd.f32 1.0, %v1692_v22  ;;  %v1403_v33 = vmul.f32 -1.442695, %v2384_v16  ;;  %v2388_v37 = vadd.f32 %v1550_v27, %v2329_v0 }
 0x134   : > { %v1694_v38 = vpop.eup %1693  ;;  %1715 = vpow2.f32 %v1405_v15  ;;  %v450_v40 = vpop.f32.mrf.mxu0 }
 0x135   : > { %1717 = vrcp.f32 %v626_v32  ;;  %v629_v41 = vadd.f32 1.0, %v1694_v38  ;;  %v1406_v43 = vmul.f32 -1.442695, %v2388_v37  ;;  %v2392_v44 = vadd.f32 %v2329_v0, %v450_v40 }
 0x136   : > { %v1696_v46 = vpop.eup %1695  ;;  %1719 = vpow2.f32 %v1403_v33  ;;  %v1553_v47 = vpop.f32.mrf.mxu0 }
 0x137   : > { %1721 = vrcp.f32 %v629_v41  ;;  %v627_v48 = vadd.f32 1.0, %v1696_v46  ;;  %v1404_v49 = vmul.f32 -1.442695, %v2392_v44  ;;  %v2396_v51 = vadd.f32 %v1553_v47, %v2329_v0 }
 0x138   : > { %v1698_v52 = vpop.eup %1697  ;;  %1723 = vpow2.f32 %v1406_v43  ;;  %v463_v53 = vpop.f32.mrf.mxu0 }
 0x139   : > { %v1700_v54 = vpop.eup %1699  ;;  %1725 = vrcp.f32 %v627_v48  ;;  %v1409_v56 = vmul.f32 -1.442695, %v2396_v51  ;;  %v2400_v57 = vadd.f32 %v2329_v0, %v463_v53 }
 0x13a   : > { %v1702_v58 = vpop.eup %1701  ;;  %v632_v59 = vadd.f32 1.0, %v1700_v54  ;;  %1727 = vpow2.f32 %v1404_v49  ;;  %v1554_v61 = vpop.f32.mrf.mxu0 }
 0x13b   : > { %v1704_v62 = vpop.eup %1703  ;;  %1729 = vpow2.f32 %v1409_v56  ;;  %v1407_v63 = vmul.f32 -1.442695, %v2400_v57  ;;  %v2404_v1 = vadd.f32 %v1554_v61, %v2329_v0  ;;  %v718_v54 = vmul.f32 %v1702_v58, %v2336_v7 }
 0x13c   : > { %v1706_v6 = vpop.eup %1705  ;;  %1731 = vrcp.f32 %v632_v59  ;;  %v630_v8 = vadd.f32 1.0, %v1704_v62  ;;  %v466_v9 = vpop.f32.mrf.mxu0 }
 0x13d   : > { %v1708_v15 = vpop.eup %1707  ;;  %1733 = vpow2.f32 %v1407_v63  ;;  %v1410_v22 = vmul.f32 -1.442695, %v2404_v1  ;;  %v2408_v27 = vadd.f32 %v2329_v0, %v466_v9  ;;  %v721_v33 = vmul.f32 %v1706_v6, %v2340_v10 }
 0x13e   : > { %v1710_v32 = vpop.eup %1709  ;;  %1735 = vrcp.f32 %v630_v8  ;;  %v633_v38 = vadd.f32 1.0, %v1708_v15  ;;  %v1557_v40 = vpop.f32.mrf.mxu0  ;;  %v720_v10 = vmul.f32 %v1698_v52, %v2332_v2 }
 0x13f   : > { %v1712_v41 = vpop.eup %1711  ;;  %1737 = vpow2.f32 %v1410_v22  ;;  %v1408_v43 = vmul.f32 -1.442695, %v2408_v27  ;;  %v2413_v46 = vadd.f32 %v1557_v40, %v2329_v0  ;;  %v719_v47 = vmul.f32 %v1710_v32, %v2344_v21 }
 0x140   : > { %v1714_v48 = vpop.eup %1713  ;;  %1739 = vrcp.f32 %v633_v38  ;;  %v631_v49 = vadd.f32 1.0, %v1712_v41  ;;  %v479_v53 = vpop.f32.mrf.mxu0  ;;  %v751_v58 = vpack.c.bf16 %v721_v33, %v720_v10 }
 0x141   : > { %v1716_v56 = vpop.eup %1715  ;;  %1741 = vpow2.f32 %v1408_v43  ;;  %v1413_v59 = vmul.f32 -1.442695, %v2413_v46  ;;  %v2420_v61 = vadd.f32 %v2329_v0, %v479_v53  ;;  %v750_v21 = vpack.c.bf16 %v719_v47, %v718_v54 }
 0x142   : > { %v1718_v62 = vpop.eup %1717  ;;  %1743 = vrcp.f32 %v631_v49  ;;  %v636_v63 = vadd.f32 1.0, %v1716_v56  ;;  %v1558_v6 = vpop.f32.mrf.mxu0  ;;  %v724_v10 = vmul.f32 %v1714_v48, %v2348_v28 }
 0x143   : > { %v1720_v8 = vpop.eup %1719  ;;  %1745 = vpow2.f32 %v1413_v59  ;;  %v1411_v9 = vmul.f32 -1.442695, %v2420_v61  ;;  %v2424_v7 = vadd.f32 %v1558_v6, %v2329_v0  ;;  %1583 = vmatprep.mubr.bf16.mxu1 %v750_v21  ;;  %v722_v59 = vmul.f32 %v1718_v62, %v2352_v34 }
 0x144   : > { %v1722_v2 = vpop.eup %1721  ;;  %1747 = vrcp.f32 %v636_v63  ;;  %v634_v52 = vadd.f32 1.0, %v1720_v8  ;;  %v482_v15 = vpop.f32.mrf.mxu0  ;;  %1584 = vmatmul.mubr.bf16.vlgmr.msra.gmra.mxu1 %v751_v58 }
 0x145   : > { %v1724_v22 = vpop.eup %1723  ;;  %1749 = vpow2.f32 %v1411_v9  ;;  %v1414_v32 = vmul.f32 -1.442695, %v2424_v7  ;;  %v2428_v38 = vadd.f32 %v2329_v0, %v482_v15  ;;  %v725_v41 = vmul.f32 %v1722_v2, %v2356_v39 }
 0x146   : > { %v1726_v40 = vpop.eup %1725  ;;  %1751 = vrcp.f32 %v634_v52  ;;  %v637_v43 = vadd.f32 1.0, %v1724_v22  ;;  %v1561_v47 = vpop.f32.mrf.mxu0 }
 0x147   : > { %v1728_v33 = vpop.eup %1727  ;;  %v723_v49 = vmul.f32 %v1726_v40, %v2360_v42  ;;  %1753 = vpow2.f32 %v1414_v32  ;;  %v1412_v53 = vmul.f32 -1.442695, %v2428_v38  ;;  %v2434_v54 = vadd.f32 %v1561_v47, %v2329_v0 }
 0x148   : > { %v1730_v56 = vpop.eup %1729  ;;  %1755 = vrcp.f32 %v637_v43  ;;  %v635_v63 = vadd.f32 1.0, %v1728_v33  ;;  %v495_v39 = vpop.f32.mrf.mxu0  ;;  %v753_v52 = vpack.c.bf16 %v725_v41, %v724_v10 }
 0x149   : > { %v1732_v6 = vpop.eup %1731  ;;  %v640_v21 = vadd.f32 1.0, %v1730_v56  ;;  %1757 = vpow2.f32 %v1412_v53  ;;  %v1417_v8 = vmul.f32 -1.442695, %v2434_v54  ;;  %v2440_v42 = vadd.f32 %v2329_v0, %v495_v39 }
 0x14a   : > { %v1734_v9 = vpop.eup %1733  ;;  %1759 = vrcp.f32 %v635_v63  ;;  %v1562_v58 = vpop.f32.mrf.mxu0  ;;  %v752_v2 = vpack.c.bf16 %v723_v49, %v722_v59  ;;  %v728_v39 = vmul.f32 %v1732_v6, %v2364_v45 }
 0x14b   : > { %v1736_v15 = vpop.eup %1735  ;;  %1761 = vrcp.f32 %v640_v21  ;;  %v638_v28 = vadd.f32 1.0, %v1734_v9  ;;  %v1415_v34 = vmul.f32 -1.442695, %v2440_v42  ;;  %v2444_v48 = vadd.f32 %v1562_v58, %v2329_v0 }
 0x14c   : > { %v1738_v62 = vpop.eup %1737  ;;  %1763 = vpow2.f32 %v1417_v8  ;;  %1587 = vmatprep.mubr.bf16.mxu1 %v752_v2  ;;  %v498_v22 = vpop.f32.mrf.mxu0  ;;  %v726_v21 = vmul.f32 %v1736_v15, %v2368_v50 }
 0x14d   : > { %v1740_v32 = vpop.eup %1739  ;;  %1765 = vrcp.f32 %v638_v28  ;;  %v641_v40 = vadd.f32 1.0, %v1738_v62  ;;  %v1418_v43 = vmul.f32 -1.442695, %v2444_v48  ;;  %v2448_v47 = vadd.f32 %v2329_v0, %v498_v22  ;;  %1588 = vmatmul.mubr.bf16.gmra.mxu1 %v753_v52 }
 0x14e   : > { %v1742_v41 = vpop.eup %1741  ;;  %v729_v33 = vmul.f32 %v1740_v32, %v2372_v55  ;;  %1767 = vpow2.f32 %v1415_v34  ;;  %v1565_v49 = vpop.f32.mrf.mxu0 }
 0x14f   : > { %v1744_v53 = vpop.eup %1743  ;;  %1769 = vrcp.f32 %v641_v40  ;;  %v639_v56 = vadd.f32 1.0, %v1742_v41  ;;  %v1416_v10 = vmul.f32 -1.442695, %v2448_v47  ;;  %v2453_v59 = vadd.f32 %v1565_v49, %v2329_v0 }
 0x150   : > { %v1746_v63 = vpop.eup %1745  ;;  %v727_v8 = vmul.f32 %v1744_v53, %v2376_v60  ;;  %1771 = vpow2.f32 %v1418_v43  ;;  %v511_v9 = vpop.f32.mrf.mxu0  ;;  %v755_v22 = vpack.c.bf16 %v729_v33, %v728_v39 }
 0x151   : > { %v1748_v55 = vpop.eup %1747  ;;  %1773 = vrcp.f32 %v639_v56  ;;  %v644_v58 = vadd.f32 1.0, %v1746_v63  ;;  %v1421_v2 = vmul.f32 -1.442695, %v2453_v59  ;;  %v2460_v52 = vadd.f32 %v2329_v0, %v511_v9 }
 0x152   : > { %v1750_v28 = vpop.eup %1749  ;;  %1775 = vpow2.f32 %v1416_v10  ;;  %v1566_v34 = vpop.f32.mrf.mxu0  ;;  %v754_v62 = vpack.c.bf16 %v727_v8, %v726_v21 }
 0x153   : > { %v1752_v45 = vpop.eup %1751  ;;  %1777 = vrcp.f32 %v644_v58  ;;  %v642_v50 = vadd.f32 1.0, %v1750_v28  ;;  %v1419_v60 = vmul.f32 -1.442695, %v2460_v52  ;;  %v2464_v6 = vadd.f32 %v1566_v34, %v2329_v0 }
 0x154   : > { %v1754_v15 = vpop.eup %1753  ;;  %1779 = vpow2.f32 %v1421_v2  ;;  %1591 = vmatprep.mubr.bf16.mxu1 %v754_v62  ;;  %v514_v32 = vpop.f32.mrf.mxu0  ;;  %v730_v21 = vmul.f32 %v1752_v45, %v2384_v16 }
 0x155   : > { %v1756_v40 = vpop.eup %1755  ;;  %1781 = vrcp.f32 %v642_v50  ;;  %v645_v43 = vadd.f32 1.0, %v1754_v15  ;;  %v1422_v41 = vmul.f32 -1.442695, %v2464_v6  ;;  %v2468_v49 = vadd.f32 %v2329_v0, %v514_v32  ;;  %1592 = vmatmul.mubr.bf16.gmra.mxu1 %v755_v22 }
 0x156   : > { %v1758_v33 = vpop.eup %1757  ;;  %1783 = vpow2.f32 %v1419_v60  ;;  %v733_v56 = vmul.f32 %v1756_v40, %v2388_v37  ;;  %v732_v0 = vmul.f32 %v1748_v55, %v2380_v3 }
 0x157   : > { %v1760_v53 = vpop.eup %1759  ;;  %1785 = vrcp.f32 %v645_v43  ;;  %v643_v10 = vadd.f32 1.0, %v1758_v33  ;;  %v1420_v63 = vmul.f32 -1.442695, %v2468_v49 }
 0x158   : > { %v1762_v39 = vpop.eup %1761  ;;  %v731_v8 = vmul.f32 %v1760_v53, %v2392_v44  ;;  %1787 = vpow2.f32 %v1422_v41  ;;  %v757_v34 = vpack.c.bf16 %v733_v56, %v732_v0 }
 0x159   : > { %v1764_v9 = vpop.eup %1763  ;;  %1789 = vrcp.f32 %v643_v10  ;;  %v736_v43 = vmul.f32 %v1762_v39, %v2396_v51 }
 0x15a   : > { %v1766_v58 = vpop.eup %1765  ;;  %1791 = vpow2.f32 %v1420_v63  ;;  %v756_v2 = vpack.c.bf16 %v731_v8, %v730_v21  ;;  %v648_v50 = vadd.f32 1.0, %v1764_v9 }
 0x15b   : > { %v1768_v28 = vpop.eup %1767  ;;  %v734_v44 = vmul.f32 %v1766_v58, %v2400_v57 }
 0x15c   : > { %v1770_v37 = vpop.eup %1769  ;;  %v646_v62 = vadd.f32 1.0, %v1768_v28  ;;  %1595 = vmatprep.mubr.bf16.mxu1 %v756_v2 }
 0x15d   : > { %v1772_v22 = vpop.eup %1771  ;;  %1596 = vmatmul.mubr.bf16.gmra.mxu1 %v757_v34  ;;  %v737_v15 = vmul.f32 %v1770_v37, %v2404_v1 }
 0x15e   : > { %v1774_v60 = vpop.eup %1773  ;;  %v649_v16 = vadd.f32 1.0, %v1772_v22  ;;  %1793 = vrcp.f32 %v646_v62 }
 0x15f   : > { %v1776_v45 = vpop.eup %1775  ;;  %v735_v3 = vmul.f32 %v1774_v60, %v2408_v27  ;;  %v759_v56 = vpack.c.bf16 %v737_v15, %v736_v43 }
 0x160   : > { %v1778_v55 = vpop.eup %1777  ;;  %1795 = vrcp.f32 %v649_v16  ;;  %v647_v32 = vadd.f32 1.0, %v1776_v45 }
 0x161   : > { %v1780_v40 = vpop.eup %1779  ;;  %1797 = vrcp.f32 %v648_v50  ;;  %v758_v41 = vpack.c.bf16 %v735_v3, %v734_v44  ;;  %v740_v58 = vmul.f32 %v1778_v55, %v2413_v46 }
 0x162   : > { %v1782_v33 = vpop.eup %1781  ;;  %1799 = vrcp.f32 %v647_v32  ;;  %v652_v1 = vadd.f32 1.0, %v1780_v40 }
 0x163   : > { %v1784_v53 = vpop.eup %1783  ;;  %1599 = vmatprep.mubr.bf16.mxu1 %v758_v41  ;;  %v738_v9 = vmul.f32 %v1782_v33, %v2420_v61 }
 0x164   : > { %v1786_v10 = vpop.eup %1785  ;;  %v650_v57 = vadd.f32 1.0, %v1784_v53 }
 0x165   : > { %v1788_v63 = vpop.eup %1787  ;;  %1600 = vmatmul.mubr.bf16.gmra.mxu1 %v759_v56  ;;  %v741_v0 = vmul.f32 %v1786_v10, %v2424_v7 }
 0x166   : > { %v1790_v27 = vpop.eup %1789  ;;  %v653_v21 = vadd.f32 1.0, %v1788_v63  ;;  %1801 = vrcp.f32 %v650_v57 }
 0x167   : > { %v1792_v8 = vpop.eup %1791  ;;  %v739_v51 = vmul.f32 %v1790_v27, %v2428_v38  ;;  %v761_v28 = vpack.c.bf16 %v741_v0, %v740_v58 }
 0x168   : > { %1803 = vrcp.f32 %v653_v21  ;;  %v651_v39 = vadd.f32 1.0, %v1792_v8 }
 0x169   : > { %1805 = vrcp.f32 %v652_v1  ;;  %v760_v2 = vpack.c.bf16 %v739_v51, %v738_v9 }
 0x16a   : > { %1807 = vrcp.f32 %v651_v39 }
 0x16b   : > { %1603 = vmatprep.mubr.bf16.mxu1 %v760_v2  ;;  %v1794_v34 = vpop.eup %1793 }
 0x16c   : > { %v742_v7 = vmul.f32 %v1794_v34, %v2440_v42 }
 0x16d   : > { %v1796_v37 = vpop.eup %1795  ;;  %1604 = vmatmul.mubr.bf16.gmra.mxu1 %v761_v28 }
 0x16e   : > { %v1798_v62 = vpop.eup %1797  ;;  %v745_v61 = vmul.f32 %v1796_v37, %v2444_v48 }
 0x16f   : > { %v1800_v22 = vpop.eup %1799  ;;  %v744_v50 = vmul.f32 %v1798_v62, %v2434_v54  ;;  %v2494_v54 = vld [vmem:[%s2778_s4] ss:$0 sm:$0xff] }
 0x170   : > { %v743_v38 = vmul.f32 %v1800_v22, %v2448_v47 }
 0x171   : > { %v763_v46 = vpack.c.bf16 %v745_v61, %v744_v50 }
 0x172   : > { %v762_v60 = vpack.c.bf16 %v743_v38, %v742_v7 }
 0x173   : > { %v1802_v16 = vpop.eup %1801 }
 0x174   : > { %1607 = vmatprep.mubr.bf16.mxu1 %v762_v60  ;;  %v746_v55 = vmul.f32 %v1802_v16, %v2460_v52 }
 0x175   : > { %v1804_v45 = vpop.eup %1803  ;;  %1608 = vmatmul.mubr.bf16.gmra.mxu1 %v763_v46 }
 0x176   : > { %v1806_v44 = vpop.eup %1805  ;;  %v749_v3 = vmul.f32 %v1804_v45, %v2464_v6 }
 0x177   : > { %v1808_v15 = vpop.eup %1807  ;;  %v748_v42 = vmul.f32 %v1806_v44, %v2453_v59 }
 0x178   : > { %v747_v48 = vmul.f32 %v1808_v15, %v2468_v49 }
 0x179   : > { %v765_v47 = vpack.c.bf16 %v749_v3, %v748_v42 }
 0x17a   : > { %v764_v32 = vpack.c.bf16 %v747_v48, %v746_v55 }
 0x17c   : > { %1611 = vmatprep.mubr.bf16.mxu1 %v764_v32 }
 0x17d   : > { %1612 = vmatmul.mubr.bf16.gmra.mxu1 %v765_v47 }
 0x204   : > { %v1585_v40 = vpop.f32.mrf.mxu1 }
 0x205   : > { %v880_v43 = vadd.f32 %v1585_v40, %v2494_v54 }
 0x206   : > { %v871_v41 = vpop.f32.mrf.mxu1 }
 0x207   : > { %v2498_v6 = vadd.f32 %v880_v43, %v2222_v11  ;;  %v872_v52 = vadd.f32 %v2494_v54, %v871_v41 }
 0x208   : > { %v1586_v49 = vpop.f32.mrf.mxu1 }
 0x209   : > { %v1434_v59 = vmul.f32 -1.442695, %v2498_v6  ;;  %v2503_v33 = vadd.f32 %v872_v52, %v2202_v4  ;;  %v883_v53 = vadd.f32 %v1586_v49, %v2494_v54 }
 0x20a   : > { %v874_v56 = vpop.f32.mrf.mxu1 }
 0x20b   : > { %1809 = vpow2.f32 %v1434_v59  ;;  %v1432_v10 = vmul.f32 -1.442695, %v2503_v33  ;;  %v2508_v57 = vadd.f32 %v883_v53, %v2225_v12  ;;  %v875_v11 = vadd.f32 %v2494_v54, %v874_v56 }
 0x20d   : > { %v1589_v63 = vpop.f32.mrf.mxu1  ;;  %1811 = vpow2.f32 %v1432_v10  ;;  %v1435_v1 = vmul.f32 -1.442695, %v2508_v57  ;;  %v2513_v27 = vadd.f32 %v875_v11, %v2205_v5 }
 0x20e   : > { %v896_v4 = vadd.f32 %v1589_v63, %v2494_v54 }
 0x20f   : > { %v887_v21 = vpop.f32.mrf.mxu1  ;;  %1813 = vpow2.f32 %v1435_v1  ;;  %v1433_v8 = vmul.f32 -1.442695, %v2513_v27 }
 0x210   : > { %v2518_v9 = vadd.f32 %v896_v4, %v2238_v17  ;;  %v888_v12 = vadd.f32 %v2494_v54, %v887_v21 }
 0x211   : > { %v1590_v0 = vpop.f32.mrf.mxu1  ;;  %1815 = vpow2.f32 %v1433_v8 }
 0x212   : > { %v1438_v51 = vmul.f32 -1.442695, %v2518_v9  ;;  %v2523_v39 = vadd.f32 %v888_v12, %v2228_v13  ;;  %v899_v5 = vadd.f32 %v1590_v0, %v2494_v54 }
 0x213   : > { %v890_v58 = vpop.f32.mrf.mxu1 }
 0x214   : > { %1817 = vpow2.f32 %v1438_v51  ;;  %v1436_v2 = vmul.f32 -1.442695, %v2523_v39  ;;  %v2528_v28 = vadd.f32 %v899_v5, %v2241_v18  ;;  %v891_v17 = vadd.f32 %v2494_v54, %v890_v58 }
 0x215   : > { %v1593_v34 = vpop.f32.mrf.mxu1 }
 0x216   : > { %1819 = vpow2.f32 %v1436_v2  ;;  %v1439_v37 = vmul.f32 -1.442695, %v2528_v28  ;;  %v2533_v62 = vadd.f32 %v891_v17, %v2231_v14  ;;  %v912_v13 = vadd.f32 %v1593_v34, %v2494_v54 }
 0x217   : > { %v903_v22 = vpop.f32.mrf.mxu1 }
 0x218   : > { %1821 = vpow2.f32 %v1439_v37  ;;  %v1437_v61 = vmul.f32 -1.442695, %v2533_v62  ;;  %v2538_v7 = vadd.f32 %v912_v13, %v2254_v23  ;;  %v904_v18 = vadd.f32 %v2494_v54, %v903_v22  ;;  %v1810_v38 = vpop.eup %1809 }
 0x219   : > { %v1594_v50 = vpop.f32.mrf.mxu1  ;;  %v1128_v60 = vadd.f32 1.0, %v1810_v38 }
 0x21a   : > { %1823 = vpow2.f32 %v1437_v61  ;;  %v1442_v46 = vmul.f32 -1.442695, %v2538_v7  ;;  %v2543_v14 = vadd.f32 %v904_v18, %v2244_v19  ;;  %v1812_v16 = vpop.eup %1811  ;;  %v915_v45 = vadd.f32 %v1594_v50, %v2494_v54 }
 0x21b   : > { %v906_v44 = vpop.f32.mrf.mxu1  ;;  %1825 = vrcp.f32 %v1128_v60  ;;  %v1126_v15 = vadd.f32 1.0, %v1812_v16 }
 0x21c   : > { %v1440_v23 = vmul.f32 -1.442695, %v2543_v14  ;;  %v907_v3 = vadd.f32 %v2494_v54, %v906_v44  ;;  %v1814_v55 = vpop.eup %1813  ;;  %1827 = vpow2.f32 %v1442_v46  ;;  %v2549_v48 = vadd.f32 %v915_v45, %v2257_v24 }
 0x21d   : > { %v1597_v42 = vpop.f32.mrf.mxu1  ;;  %1829 = vrcp.f32 %v1126_v15  ;;  %v1129_v32 = vadd.f32 1.0, %v1814_v55 }
 0x21e   : > { %v2552_v19 = vadd.f32 %v907_v3, %v2247_v20  ;;  %v928_v47 = vadd.f32 %v1597_v42, %v2494_v54  ;;  %v1816_v40 = vpop.eup %1815  ;;  %1831 = vpow2.f32 %v1440_v23  ;;  %v1443_v43 = vmul.f32 -1.442695, %v2549_v48 }
 0x21f   : > { %v919_v41 = vpop.f32.mrf.mxu1  ;;  %1833 = vrcp.f32 %v1129_v32  ;;  %v1127_v52 = vadd.f32 1.0, %v1816_v40 }
 0x220   : > { %v1441_v49 = vmul.f32 -1.442695, %v2552_v19  ;;  %v2558_v24 = vadd.f32 %v928_v47, %v2270_v29  ;;  %1835 = vpow2.f32 %v1443_v43  ;;  %v920_v53 = vadd.f32 %v2494_v54, %v919_v41 }
 0x221   : > { %v1818_v59 = vpop.eup %1817  ;;  %v1598_v20 = vpop.f32.mrf.mxu1  ;;  %1837 = vrcp.f32 %v1127_v52 }
 0x222   : > { %v1132_v56 = vadd.f32 1.0, %v1818_v59  ;;  %v1446_v10 = vmul.f32 -1.442695, %v2558_v24  ;;  %v931_v11 = vadd.f32 %v1598_v20, %v2494_v54  ;;  %1839 = vpow2.f32 %v1441_v49 }
 0x223   : > { %v1820_v63 = vpop.eup %1819  ;;  %v2564_v1 = vadd.f32 %v920_v53, %v2260_v25  ;;  %v922_v4 = vpop.f32.mrf.mxu1 }
 0x224   : > { %1841 = vrcp.f32 %v1132_v56  ;;  %v1130_v29 = vadd.f32 1.0, %v1820_v63  ;;  %v2567_v21 = vadd.f32 %v931_v11, %v2273_v30  ;;  %v923_v8 = vadd.f32 %v2494_v54, %v922_v4  ;;  %v1938_v11 = vld [vmem:[%s2183_s28 + $0xb0] sm:$0xff] }
 0x225   : > { %v1822_v12 = vpop.eup %1821  ;;  %1843 = vpow2.f32 %v1446_v10  ;;  %v1444_v0 = vmul.f32 -1.442695, %v2564_v1  ;;  %v1601_v51 = vpop.f32.mrf.mxu1 }
 0x226   : > { %1845 = vrcp.f32 %v1130_v29  ;;  %v1133_v5 = vadd.f32 1.0, %v1822_v12  ;;  %v1447_v58 = vmul.f32 -1.442695, %v2567_v21  ;;  %v2573_v25 = vadd.f32 %v923_v8, %v2263_v26 }
 0x227   : > { %v1824_v2 = vpop.eup %1823  ;;  %1847 = vpow2.f32 %v1444_v0  ;;  %v944_v17 = vadd.f32 %v1601_v51, %v2494_v54  ;;  %v935_v30 = vpop.f32.mrf.mxu1 }
 0x228   : > { %1849 = vrcp.f32 %v1133_v5  ;;  %v1131_v34 = vadd.f32 1.0, %v1824_v2  ;;  %v1445_v37 = vmul.f32 -1.442695, %v2573_v25  ;;  %v936_v13 = vadd.f32 %v2494_v54, %v935_v30  ;;  %v1826_v22 = vpop.eup %1825 }
 0x229   : > { %1851 = vpow2.f32 %v1447_v58  ;;  %v2579_v61 = vadd.f32 %v944_v17, %v2283_v35  ;;  %v1602_v18 = vpop.f32.mrf.mxu1  ;;  %v1828_v26 = vpop.eup %1827  ;;  %v1224_v38 = vmul.f32 %v1826_v22, %v2498_v6 }
 0x22a   : > { %1853 = vrcp.f32 %v1131_v34  ;;  %v2583_v50 = vadd.f32 %v936_v13, %v2276_v31  ;;  %v947_v60 = vadd.f32 %v1602_v18, %v2494_v54  ;;  %v1830_v46 = vpop.eup %1829  ;;  %v1136_v16 = vadd.f32 1.0, %v1828_v26  ;;  %v1940_v34 = vld [vmem:[%s2183_s28 + $0xb8] sm:$0xff] }
 0x22b   : > { %1855 = vpow2.f32 %v1445_v37  ;;  %v1450_v45 = vmul.f32 -1.442695, %v2579_v61  ;;  %v938_v44 = vpop.f32.mrf.mxu1  ;;  %v1832_v15 = vpop.eup %1831  ;;  %1256 = vst [vmem:[%s2589_s13 + $0x10] sm:$0xff] %v1224_v38  ;;  %v1222_v35 = vmul.f32 %v1830_v46, %v2503_v33  ;;  %v1937_v33 = vld [vmem:[%s2183_s28 + $0x88] sm:$0xff] }
 0x22c   : > { %v1448_v31 = vmul.f32 -1.442695, %v2583_v50  ;;  %v2595_v6 = vadd.f32 %v947_v60, %v2286_v36  ;;  %v939_v23 = vadd.f32 %v2494_v54, %v938_v44  ;;  %v1834_v3 = vpop.eup %1833  ;;  %1857 = vrcp.f32 %v1136_v16  ;;  %v1941_v44 = vld [vmem:[%s2183_s28 + $0xa8] sm:$0xff] }
 0x22d   : > { %v1134_v55 = vadd.f32 1.0, %v1832_v15  ;;  %v1605_v42 = vpop.f32.mrf.mxu1  ;;  %v1836_v32 = vpop.eup %1835  ;;  %1254 = vst [vmem:[%s2589_s13] sm:$0xff] %v1222_v35  ;;  %v1225_v47 = vmul.f32 %v1834_v3, %v2508_v57  ;;  %1859 = vpow2.f32 %v1450_v45 }
 0x22e   : > { %v1451_v40 = vmul.f32 -1.442695, %v2595_v6  ;;  %v2602_v43 = vadd.f32 %v1937_v33, %v939_v23  ;;  %v1838_v36 = vpop.eup %1837  ;;  %v1137_v41 = vadd.f32 1.0, %v1836_v32  ;;  %v960_v52 = vadd.f32 %v1605_v42, %v2494_v54 }
 0x22f   : > { %1861 = vrcp.f32 %v1134_v55  ;;  %v951_v49 = vpop.f32.mrf.mxu1  ;;  %v1840_v59 = vpop.eup %1839  ;;  %1257 = vst [vmem:[%s2589_s13 + $0x18] sm:$0xff] %v1225_v47  ;;  %v1223_v53 = vmul.f32 %v1838_v36, %v2513_v27  ;;  %v1939_v27 = vld [vmem:[%s2183_s28 + $0xa0] sm:$0xff] }
 0x230   : > { %1863 = vpow2.f32 %v1448_v31  ;;  %v1449_v57 = vmul.f32 -1.442695, %v2602_v43  ;;  %v952_v20 = vadd.f32 %v2494_v54, %v951_v49  ;;  %v1135_v10 = vadd.f32 1.0, %v1840_v59  ;;  %v1943_v36 = vld [vmem:[%s2183_s28 + $0xc0] sm:$0xff] }
 0x231   : > { %v1842_v56 = vpop.eup %1841  ;;  %1865 = vrcp.f32 %v1137_v41  ;;  %v2610_v63 = vadd.f32 %v1938_v11, %v960_v52  ;;  %v1606_v4 = vpop.f32.mrf.mxu1  ;;  %1255 = vst [vmem:[%s2589_s13 + $0x8] sm:$0xff] %v1223_v53 }
 0x232   : > { %v1844_v29 = vpop.eup %1843  ;;  %v1228_v8 = vmul.f32 %v1842_v56, %v2518_v9  ;;  %1867 = vpow2.f32 %v1451_v40  ;;  %v2615_v12 = vadd.f32 %v1939_v27, %v952_v20  ;;  %v963_v0 = vadd.f32 %v1606_v4, %v2494_v54  ;;  %v1944_v56 = vld [vmem:[%s2183_s28 + $0xd8] sm:$0xff] }
 0x233   : > { %v1846_v51 = vpop.eup %1845  ;;  %1869 = vrcp.f32 %v1135_v10  ;;  %v1140_v5 = vadd.f32 1.0, %v1844_v29  ;;  %v1454_v58 = vmul.f32 -1.442695, %v2610_v63  ;;  %v954_v2 = vpop.f32.mrf.mxu1 }
 0x234   : > { %v1848_v17 = vpop.eup %1847  ;;  %1260 = vst [vmem:[%s2589_s13 + $0x30] sm:$0xff] %v1228_v8  ;;  %v1226_v30 = vmul.f32 %v1846_v51, %v2523_v39  ;;  %1871 = vpow2.f32 %v1449_v57  ;;  %v1452_v9 = vmul.f32 -1.442695, %v2615_v12  ;;  %v2623_v37 = vadd.f32 %v1940_v34, %v963_v0  ;;  %v1946_v34 = vld [vmem:[%s2183_s28 + $0xf0] sm:$0xff] }
 0x235   : > { %v1850_v13 = vpop.eup %1849  ;;  %1873 = vrcp.f32 %v1140_v5  ;;  %v1138_v22 = vadd.f32 1.0, %v1848_v17  ;;  %v955_v18 = vadd.f32 %v2494_v54, %v954_v2  ;;  %v1609_v26 = vpop.f32.mrf.mxu1  ;;  %v1945_v2 = vld [vmem:[%s2183_s28 + $0xc8] sm:$0xff] }
 0x236   : > { %v1852_v38 = vpop.eup %1851  ;;  %1258 = vst [vmem:[%s2589_s13 + $0x20] sm:$0xff] %v1226_v30  ;;  %v1229_v60 = vmul.f32 %v1850_v13, %v2528_v28  ;;  %1875 = vpow2.f32 %v1454_v58  ;;  %v1455_v39 = vmul.f32 -1.442695, %v2623_v37  ;;  %v976_v46 = vadd.f32 %v1609_v26, %v2494_v54  ;;  %v1942_v28 = vld [vmem:[%s2183_s28 + $0xd0] sm:$0xff] }
 0x237   : > { %v1854_v16 = vpop.eup %1853  ;;  %1877 = vrcp.f32 %v1138_v22  ;;  %v1141_v45 = vadd.f32 1.0, %v1852_v38  ;;  %v2631_v15 = vadd.f32 %v1941_v44, %v955_v18  ;;  %v967_v35 = vpop.f32.mrf.mxu1 }
 0x238   : > { %v1856_v31 = vpop.eup %1855  ;;  %1261 = vst [vmem:[%s2589_s13 + $0x38] sm:$0xff] %v1229_v60  ;;  %v1227_v23 = vmul.f32 %v1854_v16, %v2533_v62  ;;  %1879 = vpow2.f32 %v1452_v9  ;;  %v2636_v3 = vadd.f32 %v1942_v28, %v976_v46  ;;  %v968_v55 = vadd.f32 %v2494_v54, %v967_v35  ;;  %v1947_v16 = vld [vmem:[%s2183_s28 + $0xe0] sm:$0xff] }
 0x239   : > { %1881 = vrcp.f32 %v1141_v45  ;;  %v1139_v42 = vadd.f32 1.0, %v1856_v31  ;;  %v1453_v32 = vmul.f32 -1.442695, %v2631_v15  ;;  %v1610_v47 = vpop.f32.mrf.mxu1  ;;  %v1858_v40 = vpop.eup %1857 }
 0x23a   : > { %1259 = vst [vmem:[%s2589_s13 + $0x28] sm:$0xff] %v1227_v23  ;;  %1883 = vpow2.f32 %v1455_v39  ;;  %v1458_v33 = vmul.f32 -1.442695, %v2636_v3  ;;  %v2643_v62 = vadd.f32 %v1943_v36, %v968_v55  ;;  %v979_v41 = vadd.f32 %v1610_v47, %v2494_v54  ;;  %v1860_v52 = vpop.eup %1859 }
 0x23b   : > { %v1232_v49 = vmul.f32 %v1858_v40, %v2538_v7  ;;  %1885 = vrcp.f32 %v1139_v42  ;;  %v970_v59 = vpop.f32.mrf.mxu1  ;;  %v1144_v57 = vadd.f32 1.0, %v1860_v52  ;;  %v1948_v40 = vld [vmem:[%s2183_s28 + $0xf8] sm:$0xff] }
 0x23c   : > { %v1862_v53 = vpop.eup %1861  ;;  %1887 = vpow2.f32 %v1453_v32  ;;  %v1456_v20 = vmul.f32 -1.442695, %v2643_v62  ;;  %v2649_v10 = vadd.f32 %v1944_v56, %v979_v41  ;;  %v971_v29 = vadd.f32 %v2494_v54, %v970_v59  ;;  %v1949_v41 = vld [vmem:[%s2183_s28 + $0xe8] sm:$0xff]  ;;  %s1300_s28 = sshll.u32 %s2589_s13, 4  ;;  %s2728_s28 = int_to_ptr.vmem [resolvable:$true] %s1300_s28 }
 0x23d   : > { %v1864_v11 = vpop.eup %1863  ;;  %1264 = vst [vmem:[%s2589_s13 + $0x50] sm:$0xff] %v1232_v49  ;;  %v1230_v4 = vmul.f32 %v1862_v53, %v2543_v14  ;;  %1889 = vpow2.f32 %v1458_v33  ;;  %v1613_v7 = vpop.f32.mrf.mxu1  ;;  %s1978_s14 = scalar_lea.vmem %s2728_s28, 4096  ;;  %p1985_p5 = scmp.lt.s32.totalorder %s2728_s28, %s1983_s16 }
 0x23e   : > { %v1866_v8 = vpop.eup %1865  ;;  %1891 = vrcp.f32 %v1144_v57  ;;  %v1142_v27 = vadd.f32 1.0, %v1864_v11  ;;  %v1459_v0 = vmul.f32 -1.442695, %v2649_v10  ;;  %v992_v51 = vadd.f32 %v1613_v7, %v2494_v54  ;;  %p1979_p11 = scmp.ne.s32.totalorder %s2728_s28, %s1978_s14  ;;  %p1986_p7 = scmp.lt.s32.totalorder %s1984_s8, %s1978_s14 }
 0x23f   : > { %v1868_v5 = vpop.eup %1867  ;;  %1262 = vst [vmem:[%s2589_s13 + $0x40] sm:$0xff] %v1230_v4  ;;  %v1233_v58 = vmul.f32 %v1866_v8, %v2549_v48  ;;  %1893 = vpow2.f32 %v1456_v20  ;;  %v2659_v14 = vadd.f32 %v1945_v2, %v971_v29  ;;  %v983_v17 = vpop.f32.mrf.mxu1 }
 0x240   : > { %v1870_v30 = vpop.eup %1869  ;;  %1895 = vrcp.f32 %v1142_v27  ;;  %v1145_v9 = vadd.f32 1.0, %v1868_v5  ;;  %v2662_v13 = vadd.f32 %v1946_v34, %v992_v51  ;;  %v984_v22 = vadd.f32 %v2494_v54, %v983_v17  ;;  %p1980_p13 = pnand %p1979_p11, %p2788_p12  ;;  %p1987_p8 = por %p1986_p7, %p1985_p5 }
 0x241   : > { %v1872_v18 = vpop.eup %1871  ;;  %1265 = vst [vmem:[%s2589_s13 + $0x58] sm:$0xff] %v1233_v58  ;;  %v1231_v26 = vmul.f32 %v1870_v30, %v2552_v19  ;;  %1897 = vpow2.f32 %v1459_v0  ;;  %v1457_v48 = vmul.f32 -1.442695, %v2659_v14  ;;  %v1614_v38 = vpop.f32.mrf.mxu1 }
 0x242   : > { %v1874_v60 = vpop.eup %1873  ;;  %1899 = vrcp.f32 %v1145_v9  ;;  %v1143_v39 = vadd.f32 1.0, %v1872_v18  ;;  %v1462_v46 = vmul.f32 -1.442695, %v2662_v13  ;;  %v2670_v45 = vadd.f32 %v1947_v16, %v984_v22  ;;  %p1981_p4 = pneg %p1980_p13 }
 0x243   : > { %v1876_v44 = vpop.eup %1875  ;;  %1263 = vst [vmem:[%s2589_s13 + $0x48] sm:$0xff] %v1231_v26  ;;  %v1236_v35 = vmul.f32 %v1874_v60, %v2558_v24  ;;  %1901 = vpow2.f32 %v1457_v48  ;;  %v995_v19 = vadd.f32 %v1614_v38, %v2494_v54  ;;  %v986_v31 = vpop.f32.mrf.mxu1 }
 0x244   : > { %v1878_v23 = vpop.eup %1877  ;;  %1903 = vrcp.f32 %v1143_v39  ;;  %v1148_v28 = vadd.f32 1.0, %v1876_v44  ;;  %v1460_v55 = vmul.f32 -1.442695, %v2670_v45  ;;  %v987_v42 = vadd.f32 %v2494_v54, %v986_v31  ;;  %p1988_p10 = pnand %p1987_p8, %p1981_p4 }
 0x245   : > { %v1880_v32 = vpop.eup %1879  ;;  %1268 = vst [vmem:[%s2589_s13 + $0x70] sm:$0xff] %v1236_v35  ;;  %v1234_v47 = vmul.f32 %v1878_v23, %v2564_v1  ;;  %1905 = vpow2.f32 %v1462_v46  ;;  %v2680_v24 = vadd.f32 %v1948_v40, %v995_v19 }
 0x246   : > { %v1882_v33 = vpop.eup %1881  ;;  %1907 = vrcp.f32 %v1148_v28  ;;  %v1146_v36 = vadd.f32 1.0, %v1880_v32  ;;  %v2683_v52 = vadd.f32 %v1949_v41, %v987_v42 }
 0x247   : > { %v1884_v49 = vpop.eup %1883  ;;  %1266 = vst [vmem:[%s2589_s13 + $0x60] sm:$0xff] %v1234_v47  ;;  %v1237_v54 = vmul.f32 %v1882_v33, %v2567_v21  ;;  %1909 = vpow2.f32 %v1460_v55  ;;  %v1463_v59 = vmul.f32 -1.442695, %v2680_v24 }
 0x248   : > { %v1886_v1 = vpop.eup %1885  ;;  %1911 = vrcp.f32 %v1146_v36  ;;  %v1149_v53 = vadd.f32 1.0, %v1884_v49  ;;  %v1461_v57 = vmul.f32 -1.442695, %v2683_v52 }
 0x249   : > { %v1888_v20 = vpop.eup %1887  ;;  %1269 = vst [vmem:[%s2589_s13 + $0x78] sm:$0xff] %v1237_v54  ;;  %v1235_v56 = vmul.f32 %v1886_v1, %v2573_v25  ;;  %1913 = vpow2.f32 %v1463_v59 }
 0x24a   : > { %v1890_v11 = vpop.eup %1889  ;;  %1915 = vrcp.f32 %v1149_v53  ;;  %v1147_v4 = vadd.f32 1.0, %v1888_v20 }
 0x24b   : > { %v1892_v29 = vpop.eup %1891  ;;  %1267 = vst [vmem:[%s2589_s13 + $0x68] sm:$0xff] %v1235_v56  ;;  %v1152_v21 = vadd.f32 1.0, %v1890_v11  ;;  %1917 = vpow2.f32 %v1461_v57 }
 0x24c   : > { %v1894_v7 = vpop.eup %1893  ;;  %v1240_v8 = vmul.f32 %v1892_v29, %v2579_v61  ;;  %1919 = vrcp.f32 %v1147_v4 }
 0x24d   : > { %v1896_v27 = vpop.eup %1895  ;;  %1921 = vrcp.f32 %v1152_v21  ;;  %v1150_v0 = vadd.f32 1.0, %v1894_v7 }
 0x24e   : > { %v1898_v51 = vpop.eup %1897  ;;  %1272 = vst [vmem:[%s2589_s13 + $0x90] sm:$0xff] %v1240_v8  ;;  %v1238_v25 = vmul.f32 %v1896_v27, %v2583_v50 }
 0x24f   : > { %v1900_v5 = vpop.eup %1899  ;;  %1923 = vrcp.f32 %v1150_v0  ;;  %v1153_v58 = vadd.f32 1.0, %v1898_v51 }
 0x250   : > { %v1902_v2 = vpop.eup %1901  ;;  %1270 = vst [vmem:[%s2589_s13 + $0x80] sm:$0xff] %v1238_v25  ;;  %v1241_v17 = vmul.f32 %v1900_v5, %v2595_v6 }
 0x251   : > { %v1904_v30 = vpop.eup %1903  ;;  %1925 = vrcp.f32 %v1153_v58  ;;  %v1151_v61 = vadd.f32 1.0, %v1902_v2 }
 0x252   : > { %v1906_v9 = vpop.eup %1905  ;;  %1273 = vst [vmem:[%s2589_s13 + $0x98] sm:$0xff] %v1241_v17  ;;  %v1239_v34 = vmul.f32 %v1904_v30, %v2602_v43 }
 0x253   : > { %v1908_v22 = vpop.eup %1907  ;;  %1927 = vrcp.f32 %v1151_v61  ;;  %v1156_v50 = vadd.f32 1.0, %v1906_v9 }
 0x254   : > { %v1910_v18 = vpop.eup %1909  ;;  %1271 = vst [vmem:[%s2589_s13 + $0x88] sm:$0xff] %v1239_v34  ;;  %v1244_v26 = vmul.f32 %v1908_v22, %v2610_v63 }
 0x255   : > { %v1912_v48 = vpop.eup %1911  ;;  %1929 = vrcp.f32 %v1156_v50  ;;  %v1154_v6 = vadd.f32 1.0, %v1910_v18 }
 0x256   : > { %v1914_v38 = vpop.eup %1913  ;;  %1276 = vst [vmem:[%s2589_s13 + $0xb0] sm:$0xff] %v1244_v26  ;;  %v1242_v60 = vmul.f32 %v1912_v48, %v2615_v12 }
 0x257   : > { %v1916_v39 = vpop.eup %1915  ;;  %1931 = vrcp.f32 %v1154_v6  ;;  %v1157_v43 = vadd.f32 1.0, %v1914_v38 }
 0x258   : > { %v1918_v46 = vpop.eup %1917  ;;  %1274 = vst [vmem:[%s2589_s13 + $0xa0] sm:$0xff] %v1242_v60  ;;  %v1245_v16 = vmul.f32 %v1916_v39, %v2623_v37 }
 0x259   : > { %v1920_v44 = vpop.eup %1919  ;;  %1933 = vrcp.f32 %v1157_v43  ;;  %v1155_v63 = vadd.f32 1.0, %v1918_v46 }
 0x25a   : > { %v1922_v35 = vpop.eup %1921  ;;  %1277 = vst [vmem:[%s2589_s13 + $0xb8] sm:$0xff] %v1245_v16  ;;  %v1243_v19 = vmul.f32 %v1920_v44, %v2631_v15 }
 0x25b   : > { %v1248_v12 = vmul.f32 %v1922_v35, %v2636_v3  ;;  %1935 = vrcp.f32 %v1155_v63 }
 0x25c   : > { %v1924_v31 = vpop.eup %1923  ;;  %1275 = vst [vmem:[%s2589_s13 + $0xa8] sm:$0xff] %v1243_v19 }
 0x25d   : > { %1280 = vst [vmem:[%s2589_s13 + $0xd0] sm:$0xff] %v1248_v12  ;;  %v1246_v37 = vmul.f32 %v1924_v31, %v2643_v62 }
 0x25e   : > { %v1926_v23 = vpop.eup %1925 }
 0x25f   : > { %1278 = vst [vmem:[%s2589_s13 + $0xc0] sm:$0xff] %v1246_v37  ;;  %v1249_v28 = vmul.f32 %v1926_v23, %v2649_v10 }
 0x260   : > { %v1928_v55 = vpop.eup %1927 }
 0x261   : > { %1281 = vst [vmem:[%s2589_s13 + $0xd8] sm:$0xff] %v1249_v28  ;;  %v1247_v15 = vmul.f32 %v1928_v55, %v2659_v14 }
 0x262   : > { %v1930_v3 = vpop.eup %1929 }
 0x263   : > { %1279 = vst [vmem:[%s2589_s13 + $0xc8] sm:$0xff] %v1247_v15  ;;  %v1252_v42 = vmul.f32 %v1930_v3, %v2662_v13 }
 0x264   : > { %v1932_v32 = vpop.eup %1931 }
 0x265   : > { %1284 = vst [vmem:[%s2589_s13 + $0xf0] sm:$0xff] %v1252_v42  ;;  %v1250_v62 = vmul.f32 %v1932_v32, %v2670_v45 }
 0x266   : > { %v1934_v47 = vpop.eup %1933 }
 0x267   : > { %1282 = vst [vmem:[%s2589_s13 + $0xe0] sm:$0xff] %v1250_v62  ;;  %v1253_v10 = vmul.f32 %v1934_v47, %v2680_v24 }
 0x268   : > { %v1936_v40 = vpop.eup %1935 }
 0x269   : > { %1285 = vst [vmem:[%s2589_s13 + $0xf8] sm:$0xff] %v1253_v10  ;;  %v1251_v14 = vmul.f32 %v1936_v40, %v2683_v52 }
 0x26b   : > { %1283 = vst [vmem:[%s2589_s13 + $0xe8] sm:$0xff] %v1251_v14 }
 0x26c   : > { %1991 = shalt.err (!%p1988_p10)
}
 0x26d   : > { %s1992_s7 = scalar_lea.hbm %s2726_s12, 4096  ;;  %s1996_s10 = scalar_lea.hbm %s2779_s5, 8192 }
 0x26e   : > { %p1993_p0 = scmp.ne.s32.totalorder %s2726_s12, %s1992_s7  ;;  %p1997_p1 = scmp.lt.s32.totalorder %s2726_s12, %s2779_s5 }
 0x26f   : > { %p1998_p3 = scmp.lt.s32.totalorder %s1996_s10, %s1992_s7 }
 0x270   : > { %p1994_p2 = pnand %p1993_p0, %p2788_p12 }
 0x271   : > { %p1999_p6 = por %p1998_p3, %p1997_p1 }
 0x272   : > { %p1995_p9 = pneg %p1994_p2 }
 0x274   : > { %p2000_p11 = pnand %p1999_p6, %p1995_p9 }
 0x276   : > { %2003 = shalt.err (!%p2000_p11)
}
 0x277   : > { %s2048_s25 = smov 128   ;;  %s2049_s17 = smov 8  }
 0x278   : > { %1617 = dma.vmem_to_hbm [thread:$0]  (%p2788_p12), %s2728_s28, 4096, %s2726_s12, %s1287_s22, %s2048_s25, %s2048_s25, %s2049_s17  }
 0x279 PF: > { %s1315_s26 = sand.u32 1, %s2030_s18   ;;  %p2789_p13 = scmp.ne.s32.totalorder %s2785_s6, 0 }
 0x27a   : > { %p2790_p4 = scmp.ge.s32.totalorder %s2042_s21, 2  ;;  %s1316_s14 = scalar_lea.sflag [#allocation4], %s1315_s26 }
 0x27c   : > { %p1624_p5 = pnand %p2790_p4, %p2789_p13 }
 0x27e   : > { %p1625_p7 = pneg %p1624_p5 }
 0x280   : > { %2025 = dma.done.wait (%p1625_p7), %s1316_s14, 4096  }
 0x281   : > { %2027 = vsyncadd (%p1625_p7), %s1316_s14, 4294963200  ;;  %p18_p8 = scmp.ge.s32.totalorder %s2105_s24, 4   ;;  %s2791_s18 = smov %s2034_s19 }
 0x282   : > { %s2792_s19 = smov %s2038_s20  ;;  %s2793_s20 = smov %s2117_s27 }
 0x283   : > { %s2794_s21 = smov %s2105_s24  ;;  %20 = sbr.rel (!%p18_p8) target bundleno = 5 (0x5), region = 85 }
 0x288   :  { %1321 = vsyncpa [#allocation3], 1 }
 0x289   :  { %1323 = vsyncpa [#allocation3 + $0x1], 1 }
 0x28a   :  { %1324 = vsyncpa [#allocation4], 1 }
 0x28b   :  { %1326 = vsyncpa [#allocation4 + $0x1], 1 }

</bundles_post_ra>
